<compile_context>
chip_gen: v6e
topology: v6e:2x2x1
jax: 0.10.0
libtpu: 0.0.40
codegen_flags: <defaults>
</compile_context>

<pallas_src>
import numpy as np
import jax
import jax.numpy as jnp
from jax.experimental import pallas as pl
from jax.experimental.pallas import tpu as pltpu

_LANE = 128
_MIB = 1024 * 1024


def _round_up(x, m):
    return ((x + m - 1) // m) * m


def _sublane_rows(rows, itemsize):
    """Rows after TPU sublane packing (8 for 32-bit, 16 for bf16, ...)."""
    mult = 8 * max(1, 4 // max(1, int(itemsize)))
    return _round_up(max(int(rows), 1), mult)


def _vmem_capacity_bytes():
    """Physical per-core VMEM (64 MiB on v7x, 128 MiB on v5e/v6e)."""
    try:
        info = pltpu.get_tpu_info()
        for attr in ("vmem_capacity_bytes", "vmem_size_bytes", "vmem_bytes"):
            v = getattr(info, attr, None)
            if v:
                return int(v)
    except Exception:
        pass
    return 64 * _MIB  # conservative default (v7x per-TensorCore)


def _concrete_dropout_conv1x1_kernel(p_logit_ref, noise_ref, x_ref, w_ref,
                                     b_ref, o_ref):
    """One grid step = one batch element x one lane tile of flattened H*W.

    p_logit_ref : SMEM (1,)            learned dropout logit
    noise_ref   : VMEM (1, C_in)       uniform(0,1) noise for this batch elem
    x_ref       : VMEM (C_in, T_HW)    input activation tile
    w_ref       : VMEM (C_out, C_in)   1x1 conv weight (f32)
    b_ref       : VMEM (C_out, 1)      conv bias (f32)
    o_ref       : VMEM (C_out, T_HW)   output tile
    """
    eps = 1e-7
    inv_temp = 1.5  # 1 / (2/3)

    u = noise_ref[...]                                  # (1, C_in) f32
    # Broadcast the scalar logit to a vector so exp/log/sigmoid stay on VPU/EUP.
    z = jnp.full_like(u, p_logit_ref[0])                # log-odds of p

    drop_logit = z + jnp.log(u + eps) - jnp.log(1.0 - u + eps)
    drop_prob = jax.nn.sigmoid(drop_logit * inv_temp)   # (1, C_in)
    inv_retain = 1.0 + jnp.exp(z)                       # == 1 / (1 - sigmoid(z))
    scale = (1.0 - drop_prob) * inv_retain              # per-channel scale, f32

    # Fold the dropout scale into the tiny weight: W @ (x*s) == (W*s) @ x.
    x = x_ref[...]                                      # (C_in, T_HW)
    w_scaled = (w_ref[...] * scale).astype(x.dtype)     # (C_out, C_in)

    y = jnp.dot(w_scaled, x, preferred_element_type=jnp.float32)
    y = y + b_ref[...]                                  # (C_out,T_HW)+(C_out,1)
    o_ref[...] = y.astype(o_ref.dtype)


def spatial_concrete_dropout_forward(x, p_logit, unif_noise, w, b, *,
                                     compute_dtype=jnp.float32,
                                     out_dtype=None,
                                     t_hw=None):
    """SpatialConcreteDropout(Conv2d 1x1) forward.

    x          : (N, C_in, H, W)  NCHW activations (like PyTorch).
    p_logit    : (1,)             learned dropout logit.
    unif_noise : (N, C_in)        uniform(0,1) noise (torch samples this inside
                                  forward; passed explicitly here).
    w          : (C_out, C_in) or (C_out, C_in, 1, 1) conv weight.
    b          : (C_out,)         conv bias.

    On v6e/v7x pass compute_dtype=jnp.bfloat16 (and optionally a bf16
    out_dtype) to halve HBM traffic; the matmul still accumulates in f32.
    """
    N, C_in, H, W = x.shape
    C_out = w.shape[0]
    HW = H * W
    out_dtype = x.dtype if out_dtype is None else jnp.dtype(out_dtype)

    x_it = jnp.dtype(compute_dtype).itemsize
    o_it = jnp.dtype(out_dtype).itemsize

    # ---- VMEM accounting (sublane / lane padded) --------------------------
    c_in_sub = _sublane_rows(C_in, x_it)
    c_out_sub_out = _sublane_rows(C_out, o_it)
    c_in_lane = max(_round_up(C_in, _LANE), _LANE)
    resident = (2 * _round_up(C_out, 8) * c_in_lane * 4     # weight (<=2 bufs)
                + 2 * _round_up(C_out, 8) * _LANE * 4       # bias
                + 2 * 8 * c_in_lane * 4)                    # noise
    per_lane = 2 * (c_in_sub * x_it + c_out_sub_out * o_it)  # dbl-buf x + out

    phys_vmem = _vmem_capacity_bytes()
    budget = max(phys_vmem - 8 * _MIB, 16 * _MIB)

    # ---- lane tile of the flattened spatial axis --------------------------
    if t_hw is None:
        tile_budget = budget // 2              # leave half of VMEM as slack
        t_hw = int(max((tile_budget - resident) // per_lane, _LANE))
    t_hw = int(t_hw)
    if t_hw < HW:
        # Block lane dim must be a multiple of 128; the ragged tail tile is
        # handled by Pallas' masked loads/stores (no wrapper-side padding).
        t_hw = max(_LANE, (t_hw // _LANE) * _LANE)
    else:
        t_hw = HW                              # single full-width block
    # v7x megacore: with N == 1, split the spatial axis so both TCs get work.
    if N == 1 and t_hw == HW and HW > _LANE:
        t_half = _round_up(-(-HW // 2), _LANE)
        if t_half < HW:
            t_hw = t_half

    grid = (N, pl.cdiv(HW, t_hw))

    # ---- scoped-VMEM request: ~2x estimate, capped at physical - headroom --
    t_lane = _round_up(t_hw, _LANE)
    est = 2 * t_lane * (c_in_sub * x_it + c_out_sub_out * o_it) + resident
    vmem_limit = int(max(8 * _MIB, min(budget, 2 * est + 2 * _MIB)))

    # ---- operand prep (reshapes are free; no extra HBM passes) ------------
    x3 = x.reshape(N, C_in, HW)
    if x3.dtype != compute_dtype:
        x3 = x3.astype(compute_dtype)
    noise3 = unif_noise.reshape(N, 1, C_in).astype(jnp.float32)
    w2 = w.reshape(C_out, C_in).astype(jnp.float32)
    b2 = b.reshape(C_out, 1).astype(jnp.float32)
    p2 = p_logit.reshape(1).astype(jnp.float32)
    # NOTE: if C_in is not a multiple of 8 (f32) / 16 (bf16) the x DMA is
    # sublane-padded; fix that upstream in the producing layer's layout rather
    # than with a per-call pad (which would add a full extra HBM pass).

    def _call(single_buffer_residents):
        # Weight/bias index_maps are constant -> single buffering frees VMEM
        # that goes into a larger t_hw stream tile.
        res_kw = (dict(pipeline_mode=pl.Buffered(1))
                  if single_buffer_residents else {})
        in_specs = [
            pl.BlockSpec(memory_space=pltpu.MemorySpace.SMEM),         # p_logit
            pl.BlockSpec((None, 1, C_in), lambda n, s: (n, 0, 0)),     # noise
            pl.BlockSpec((None, C_in, t_hw), lambda n, s: (n, 0, s)),  # x tile
            pl.BlockSpec((C_out, C_in), lambda n, s: (0, 0), **res_kw),
            pl.BlockSpec((C_out, 1), lambda n, s: (0, 0), **res_kw),
        ]
        return pl.pallas_call(
            _concrete_dropout_conv1x1_kernel,
            out_shape=jax.ShapeDtypeStruct((N, C_out, HW), out_dtype),
            grid=grid,
            in_specs=in_specs,
            out_specs=pl.BlockSpec((None, C_out, t_hw),
                                   lambda n, s: (n, 0, s)),
            compiler_params=pltpu.CompilerParams(
                dimension_semantics=("parallel", "parallel"),
                vmem_limit_bytes=vmem_limit),
        )(p2, noise3, x3, w2, b2)

    try:
        out = _call(True)
    except Exception:
        # Older jax may reject single-buffered operands; fall back to the
        # default double buffering (costs a little VMEM, never correctness).
        out = _call(False)

    return out.reshape(N, C_out, H, W)


def _reference_forward(x, p_logit, unif_noise, w, b):
    """Pure-JAX reference reproducing the PyTorch forward semantics."""
    eps = 1e-7
    temp = 2.0 / 3.0
    p = jax.nn.sigmoid(p_logit.reshape(()))
    drop_prob = jax.nn.sigmoid(
        (jnp.log(p + eps) - jnp.log(1.0 - p + eps)
         + jnp.log(unif_noise + eps) - jnp.log(1.0 - unif_noise + eps)) / temp)
    random_tensor = 1.0 - drop_prob                      # (N, C_in)
    x_masked = x * random_tensor[:, :, None, None] / (1.0 - p)
    w2 = w.reshape(w.shape[0], -1)
    y = jnp.einsum('oc,nchw->nohw', w2, x_masked) + b[None, :, None, None]
    return y


if __name__ == "__main__":
    key = jax.random.PRNGKey(0)
    k_x, k_u, k_w, k_b, k_x2, k_u2, k_w2, k_b2 = jax.random.split(key, 8)

    # ---- primary case: small shapes consistent with the module ------------
    N, C_in, H, W = 2, 4, 16, 16
    C_out = 8

    x = jax.random.normal(k_x, (N, C_in, H, W), dtype=jnp.float32)
    # p_logit init: uniform(init_min, init_max) with init_min == init_max == 0.1
    # -> deterministic constant logit(0.1).
    init = float(np.log(0.1) - np.log(1.0 - 0.1))
    p_logit = jnp.full((1,), init, dtype=jnp.float32)
    # Uniform(0,1) per-(batch, channel) noise (torch samples this in forward;
    # generated deterministically with JAX PRNG and passed in).
    unif_noise = jax.random.uniform(k_u, (N, C_in), dtype=jnp.float32)
    # Wrapped layer parameters: 1x1 Conv2d(C_in -> C_out) with bias.
    w = 0.1 * jax.random.normal(k_w, (C_out, C_in), dtype=jnp.float32)
    b = 0.1 * jax.random.normal(k_b, (C_out,), dtype=jnp.float32)

    out = spatial_concrete_dropout_forward(x, p_logit, unif_noise, w, b)
    out = jax.block_until_ready(out)
    ref = _reference_forward(x, p_logit, unif_noise, w, b)
    assert out.shape == (N, C_out, H, W)
    np.testing.assert_allclose(np.asarray(out), np.asarray(ref),
                               rtol=1e-5, atol=1e-5)

    # ---- ragged case: exercises the masked lane tail (HW % 128 != 0) and the
    #      sublane-masked output store (C_out % 8 != 0), no wrapper padding ---
    N2, C_in2, H2, W2, C_out2 = 1, 4, 13, 13, 6
    x_r = jax.random.normal(k_x2, (N2, C_in2, H2, W2), dtype=jnp.float32)
    u_r = jax.random.uniform(k_u2, (N2, C_in2), dtype=jnp.float32)
    w_r = 0.1 * jax.random.normal(k_w2, (C_out2, C_in2), dtype=jnp.float32)
    b_r = 0.1 * jax.random.normal(k_b2, (C_out2,), dtype=jnp.float32)

    out_r = spatial_concrete_dropout_forward(x_r, p_logit, u_r, w_r, b_r,
                                             t_hw=128)
    out_r = jax.block_until_ready(out_r)
    ref_r = _reference_forward(x_r, p_logit, u_r, w_r, b_r)
    assert out_r.shape == (N2, C_out2, H2, W2)
    np.testing.assert_allclose(np.asarray(out_r), np.asarray(ref_r),
                               rtol=1e-5, atol=1e-5)

    print("KERNEL_OK")
</pallas_src>

<mosaic_0001>
module attributes {stable_mosaic.version = 11 : i64} {
  func.func @_concrete_dropout_conv1x1_kernel(%arg0: i32, %arg1: i32, %arg2: memref<1xf32, #tpu.memory_space<smem>>, %arg3: memref<1x1x4xf32, #tpu.memory_space<vmem>>, %arg4: memref<1x4x256xf32, #tpu.memory_space<vmem>>, %arg5: memref<8x4xf32, #tpu.memory_space<vmem>>, %arg6: memref<8x1xf32, #tpu.memory_space<vmem>>, %arg7: memref<1x8x256xf32, #tpu.memory_space<vmem>>) attributes {dimension_semantics = [#tpu.dimension_semantics<parallel>, #tpu.dimension_semantics<parallel>], iteration_bounds = array<i64: 2, 1>, scalar_prefetch = 0 : i64, scratch_operands = 0 : i64, tpu.core_type = #tpu.core_type<tc>, window_params = [{transform_indices = @transform_0, window_bounds = array<i64: 1>}, {transform_indices = @transform_1, window_bounds = array<i64: 1, 1, 4>}, {transform_indices = @transform_2, window_bounds = array<i64: 1, 4, 256>}, {pipeline_mode = #tpu.pipeline_mode<synchronous>, transform_indices = @transform_3, window_bounds = array<i64: 8, 4>}, {pipeline_mode = #tpu.pipeline_mode<synchronous>, transform_indices = @transform_4, window_bounds = array<i64: 8, 1>}, {transform_indices = @transform_5, window_bounds = array<i64: 1, 8, 256>}]} {
    %c0 = arith.constant 0 : index
    %c0_0 = arith.constant 0 : index
    %c0_1 = arith.constant 0 : index
    %0 = vector.load %arg3[%c0, %c0_0, %c0_1] : memref<1x1x4xf32, #tpu.memory_space<vmem>>, vector<1x1x4xf32>
    %1 = vector.shape_cast %0 : vector<1x1x4xf32> to vector<1x4xf32>
    %c0_2 = arith.constant 0 : index
    %2 = memref.load %arg2[%c0_2] : memref<1xf32, #tpu.memory_space<smem>>
    %3 = vector.broadcast %2 : f32 to vector<1x4xf32>
    %cst = arith.constant 1.000000e-07 : f32
    %4 = vector.broadcast %cst : f32 to vector<1x4xf32>
    %5 = arith.addf %1, %4 : vector<1x4xf32>
    %6 = math.log %5 : vector<1x4xf32>
    %7 = arith.addf %3, %6 : vector<1x4xf32>
    %cst_3 = arith.constant 1.000000e+00 : f32
    %8 = vector.broadcast %cst_3 : f32 to vector<1x4xf32>
    %9 = arith.subf %8, %1 : vector<1x4xf32>
    %cst_4 = arith.constant 1.000000e-07 : f32
    %10 = vector.broadcast %cst_4 : f32 to vector<1x4xf32>
    %11 = arith.addf %9, %10 : vector<1x4xf32>
    %12 = math.log %11 : vector<1x4xf32>
    %13 = arith.subf %7, %12 : vector<1x4xf32>
    %cst_5 = arith.constant 1.500000e+00 : f32
    %14 = vector.broadcast %cst_5 : f32 to vector<1x4xf32>
    %15 = arith.mulf %13, %14 : vector<1x4xf32>
    %16 = arith.negf %15 : vector<1x4xf32>
    %17 = math.exp %16 : vector<1x4xf32>
    %cst_6 = arith.constant 1.000000e+00 : f32
    %18 = vector.broadcast %cst_6 : f32 to vector<1x4xf32>
    %19 = arith.addf %18, %17 : vector<1x4xf32>
    %20 = arith.divf %18, %19 : vector<1x4xf32>
    %21 = math.exp %3 : vector<1x4xf32>
    %cst_7 = arith.constant 1.000000e+00 : f32
    %22 = vector.broadcast %cst_7 : f32 to vector<1x4xf32>
    %23 = arith.addf %22, %21 : vector<1x4xf32>
    %cst_8 = arith.constant 1.000000e+00 : f32
    %24 = vector.broadcast %cst_8 : f32 to vector<1x4xf32>
    %25 = arith.subf %24, %20 : vector<1x4xf32>
    %26 = arith.mulf %25, %23 : vector<1x4xf32>
    %c0_9 = arith.constant 0 : index
    %c0_10 = arith.constant 0 : index
    %c0_11 = arith.constant 0 : index
    %27 = vector.load %arg4[%c0_9, %c0_10, %c0_11] : memref<1x4x256xf32, #tpu.memory_space<vmem>>, vector<1x4x256xf32>
    %28 = vector.shape_cast %27 : vector<1x4x256xf32> to vector<4x256xf32>
    %c0_12 = arith.constant 0 : index
    %c0_13 = arith.constant 0 : index
    %29 = vector.load %arg5[%c0_12, %c0_13] : memref<8x4xf32, #tpu.memory_space<vmem>>, vector<8x4xf32>
    %30 = vector.broadcast %26 : vector<1x4xf32> to vector<8x4xf32>
    %31 = arith.mulf %29, %30 : vector<8x4xf32>
    %cst_14 = arith.constant dense<0.000000e+00> : vector<8x256xf32>
    %32 = tpu.matmul %31, %28, %cst_14 {dimension_numbers = #tpu.dot_dimension_numbers<[1], [0], [0], [1], [0, 0, 1, 1], [], []>} : vector<8x4xf32>, vector<4x256xf32>, vector<8x256xf32> -> vector<8x256xf32>
    %c0_15 = arith.constant 0 : index
    %c0_16 = arith.constant 0 : index
    %33 = vector.load %arg6[%c0_15, %c0_16] : memref<8x1xf32, #tpu.memory_space<vmem>>, vector<8x1xf32>
    %34 = vector.broadcast %33 : vector<8x1xf32> to vector<8x256xf32>
    %35 = arith.addf %32, %34 : vector<8x256xf32>
    %c0_17 = arith.constant 0 : index
    %c0_18 = arith.constant 0 : index
    %c0_19 = arith.constant 0 : index
    %36 = vector.load %arg7[%c0_17, %c0_18, %c0_19] : memref<1x8x256xf32, #tpu.memory_space<vmem>>, vector<1x8x256xf32>
    %37 = vector.shape_cast %36 : vector<1x8x256xf32> to vector<8x256xf32>
    %38 = vector.shape_cast %35 : vector<8x256xf32> to vector<1x8x256xf32>
    tpu.vector_store %arg7[%c0_17, %c0_18, %c0_19], %38 {strides = array<i32>} : memref<1x8x256xf32, #tpu.memory_space<vmem>>, vector<1x8x256xf32>,
    return
  }
  func.func @transform_0(%arg0: i32, %arg1: i32) -> i32 {
    %c0_i32 = arith.constant 0 : i32
    %c0_i32_0 = arith.constant 0 : i32
    return %c0_i32 : i32
  }
  func.func @transform_1(%arg0: i32, %arg1: i32) -> (i32, i32, i32) {
    %c0_i32 = arith.constant 0 : i32
    %c0_i32_0 = arith.constant 0 : i32
    %c0_i32_1 = arith.constant 0 : i32
    return %arg0, %c0_i32, %c0_i32_0 : i32, i32, i32
  }
  func.func @transform_2(%arg0: i32, %arg1: i32) -> (i32, i32, i32) {
    %c0_i32 = arith.constant 0 : i32
    %c0_i32_0 = arith.constant 0 : i32
    return %arg0, %c0_i32, %arg1 : i32, i32, i32
  }
  func.func @transform_3(%arg0: i32, %arg1: i32) -> (i32, i32) {
    %c0_i32 = arith.constant 0 : i32
    %c0_i32_0 = arith.constant 0 : i32
    %c0_i32_1 = arith.constant 0 : i32
    return %c0_i32, %c0_i32_0 : i32, i32
  }
  func.func @transform_4(%arg0: i32, %arg1: i32) -> (i32, i32) {
    %c0_i32 = arith.constant 0 : i32
    %c0_i32_0 = arith.constant 0 : i32
    %c0_i32_1 = arith.constant 0 : i32
    return %c0_i32, %c0_i32_0 : i32, i32
  }
  func.func @transform_5(%arg0: i32, %arg1: i32) -> (i32, i32, i32) {
    %c0_i32 = arith.constant 0 : i32
    %c0_i32_0 = arith.constant 0 : i32
    return %arg0, %c0_i32, %arg1 : i32, i32, i32
  }
}

module attributes {stable_mosaic.version = 11 : i64} {
  func.func @_concrete_dropout_conv1x1_kernel(%arg0: i32, %arg1: i32, %arg2: memref<1xf32, #tpu.memory_space<smem>>, %arg3: memref<1x1x4xf32, #tpu.memory_space<vmem>>, %arg4: memref<1x4x256xf32, #tpu.memory_space<vmem>>, %arg5: memref<8x4xf32, #tpu.memory_space<vmem>>, %arg6: memref<8x1xf32, #tpu.memory_space<vmem>>, %arg7: memref<1x8x256xf32, #tpu.memory_space<vmem>>) attributes {dimension_semantics = [#tpu.dimension_semantics<parallel>, #tpu.dimension_semantics<parallel>], iteration_bounds = array<i64: 2, 1>, scalar_prefetch = 0 : i64, scratch_operands = 0 : i64, tpu.core_type = #tpu.core_type<tc>, window_params = [{transform_indices = @transform_0, window_bounds = array<i64: 1>}, {transform_indices = @transform_1, window_bounds = array<i64: 1, 1, 4>}, {transform_indices = @transform_2, window_bounds = array<i64: 1, 4, 256>}, {pipeline_mode = #tpu.pipeline_mode<synchronous>, transform_indices = @transform_3, window_bounds = array<i64: 8, 4>}, {pipeline_mode = #tpu.pipeline_mode<synchronous>, transform_indices = @transform_4, window_bounds = array<i64: 8, 1>}, {transform_indices = @transform_5, window_bounds = array<i64: 1, 8, 256>}]} {
    %c0 = arith.constant 0 : index
    %c0_0 = arith.constant 0 : index
    %c0_1 = arith.constant 0 : index
    %0 = vector.load %arg3[%c0, %c0_0, %c0_1] : memref<1x1x4xf32, #tpu.memory_space<vmem>>, vector<1x1x4xf32>
    %1 = vector.shape_cast %0 : vector<1x1x4xf32> to vector<1x4xf32>
    %c0_2 = arith.constant 0 : index
    %2 = memref.load %arg2[%c0_2] : memref<1xf32, #tpu.memory_space<smem>>
    %3 = vector.broadcast %2 : f32 to vector<1x4xf32>
    %cst = arith.constant 1.000000e-07 : f32
    %4 = vector.broadcast %cst : f32 to vector<1x4xf32>
    %5 = arith.addf %1, %4 : vector<1x4xf32>
    %6 = math.log %5 : vector<1x4xf32>
    %7 = arith.addf %3, %6 : vector<1x4xf32>
    %cst_3 = arith.constant 1.000000e+00 : f32
    %8 = vector.broadcast %cst_3 : f32 to vector<1x4xf32>
    %9 = arith.subf %8, %1 : vector<1x4xf32>
    %cst_4 = arith.constant 1.000000e-07 : f32
    %10 = vector.broadcast %cst_4 : f32 to vector<1x4xf32>
    %11 = arith.addf %9, %10 : vector<1x4xf32>
    %12 = math.log %11 : vector<1x4xf32>
    %13 = arith.subf %7, %12 : vector<1x4xf32>
    %cst_5 = arith.constant 1.500000e+00 : f32
    %14 = vector.broadcast %cst_5 : f32 to vector<1x4xf32>
    %15 = arith.mulf %13, %14 : vector<1x4xf32>
    %16 = arith.negf %15 : vector<1x4xf32>
    %17 = math.exp %16 : vector<1x4xf32>
    %cst_6 = arith.constant 1.000000e+00 : f32
    %18 = vector.broadcast %cst_6 : f32 to vector<1x4xf32>
    %19 = arith.addf %18, %17 : vector<1x4xf32>
    %20 = arith.divf %18, %19 : vector<1x4xf32>
    %21 = math.exp %3 : vector<1x4xf32>
    %cst_7 = arith.constant 1.000000e+00 : f32
    %22 = vector.broadcast %cst_7 : f32 to vector<1x4xf32>
    %23 = arith.addf %22, %21 : vector<1x4xf32>
    %cst_8 = arith.constant 1.000000e+00 : f32
    %24 = vector.broadcast %cst_8 : f32 to vector<1x4xf32>
    %25 = arith.subf %24, %20 : vector<1x4xf32>
    %26 = arith.mulf %25, %23 : vector<1x4xf32>
    %c0_9 = arith.constant 0 : index
    %c0_10 = arith.constant 0 : index
    %c0_11 = arith.constant 0 : index
    %27 = vector.load %arg4[%c0_9, %c0_10, %c0_11] : memref<1x4x256xf32, #tpu.memory_space<vmem>>, vector<1x4x256xf32>
    %28 = vector.shape_cast %27 : vector<1x4x256xf32> to vector<4x256xf32>
    %c0_12 = arith.constant 0 : index
    %c0_13 = arith.constant 0 : index
    %29 = vector.load %arg5[%c0_12, %c0_13] : memref<8x4xf32, #tpu.memory_space<vmem>>, vector<8x4xf32>
    %30 = vector.broadcast %26 : vector<1x4xf32> to vector<8x4xf32>
    %31 = arith.mulf %29, %30 : vector<8x4xf32>
    %cst_14 = arith.constant dense<0.000000e+00> : vector<8x256xf32>
    %32 = tpu.matmul %31, %28, %cst_14 {dimension_numbers = #tpu.dot_dimension_numbers<[1], [0], [0], [1], [0, 0, 1, 1], [], []>} : vector<8x4xf32>, vector<4x256xf32>, vector<8x256xf32> -> vector<8x256xf32>
    %c0_15 = arith.constant 0 : index
    %c0_16 = arith.constant 0 : index
    %33 = vector.load %arg6[%c0_15, %c0_16] : memref<8x1xf32, #tpu.memory_space<vmem>>, vector<8x1xf32>
    %34 = vector.broadcast %33 : vector<8x1xf32> to vector<8x256xf32>
    %35 = arith.addf %32, %34 : vector<8x256xf32>
    %c0_17 = arith.constant 0 : index
    %c0_18 = arith.constant 0 : index
    %c0_19 = arith.constant 0 : index
    %36 = vector.load %arg7[%c0_17, %c0_18, %c0_19] : memref<1x8x256xf32, #tpu.memory_space<vmem>>, vector<1x8x256xf32>
    %37 = vector.shape_cast %36 : vector<1x8x256xf32> to vector<8x256xf32>
    %38 = vector.shape_cast %35 : vector<8x256xf32> to vector<1x8x256xf32>
    tpu.vector_store %arg7[%c0_17, %c0_18, %c0_19], %38 {strides = array<i32>} : memref<1x8x256xf32, #tpu.memory_space<vmem>>, vector<1x8x256xf32>,
    return
  }
  func.func @transform_0(%arg0: i32, %arg1: i32) -> i32 {
    %c0_i32 = arith.constant 0 : i32
    %c0_i32_0 = arith.constant 0 : i32
    return %c0_i32 : i32
  }
  func.func @transform_1(%arg0: i32, %arg1: i32) -> (i32, i32, i32) {
    %c0_i32 = arith.constant 0 : i32
    %c0_i32_0 = arith.constant 0 : i32
    %c0_i32_1 = arith.constant 0 : i32
    return %arg0, %c0_i32, %c0_i32_0 : i32, i32, i32
  }
  func.func @transform_2(%arg0: i32, %arg1: i32) -> (i32, i32, i32) {
    %c0_i32 = arith.constant 0 : i32
    %c0_i32_0 = arith.constant 0 : i32
    return %arg0, %c0_i32, %arg1 : i32, i32, i32
  }
  func.func @transform_3(%arg0: i32, %arg1: i32) -> (i32, i32) {
    %c0_i32 = arith.constant 0 : i32
    %c0_i32_0 = arith.constant 0 : i32
    %c0_i32_1 = arith.constant 0 : i32
    return %c0_i32, %c0_i32_0 : i32, i32
  }
  func.func @transform_4(%arg0: i32, %arg1: i32) -> (i32, i32) {
    %c0_i32 = arith.constant 0 : i32
    %c0_i32_0 = arith.constant 0 : i32
    %c0_i32_1 = arith.constant 0 : i32
    return %c0_i32, %c0_i32_0 : i32, i32
  }
  func.func @transform_5(%arg0: i32, %arg1: i32) -> (i32, i32, i32) {
    %c0_i32 = arith.constant 0 : i32
    %c0_i32_0 = arith.constant 0 : i32
    return %arg0, %c0_i32, %arg1 : i32, i32, i32
  }
}

</mosaic_0001>

<bundles_post_ra>
// kernel: tpu_custom_call.1
= control target key start
LH: loop header
LB: loop body
LE: loop exit
PB: predicated region body
PF: predicated region fallthrough
CT: control target
= control target key end

     0   :  { %s804_s0 = inlined_call_operand.<no memory space> [shape: f32[1], index: 0, kind: input, shape index: {}]   ;;  %s805_s1 = inlined_call_operand.vmem [shape: f32[2,1,4], index: 1, kind: input, shape index: {}]   ;;  %s806_s2 = inlined_call_operand.vmem [shape: f32[2,4,256], index: 2, kind: input, shape index: {}]   ;;  %s807_s3 = inlined_call_operand.vmem [shape: f32[8,4], index: 3, kind: input, shape index: {}]   ;;  %s808_s4 = inlined_call_operand.vmem [shape: f32[8,1], index: 4, kind: input, shape index: {}]   ;;  %s809_s5 = inlined_call_operand.hbm [shape: f32[2,8,256], index: 5, kind: output, shape index: {}]  }
   0x1   :  { %10 = sst [smem:[#allocation2]] %s804_s0 }
   0x2   :  { %11 = vsyncpa [#allocation4], 0 }
   0x3   :  { %13 = vsyncpa [#allocation4 + $0x1], 0  ;;  %s696_s20 = smov 0   ;;  %s698_s21 = smov 0  }
   0x4   :  { %s700_s22 = smov 0   ;;  %s702_s23 = smov 0  }
   0x5   :  { %s704_s24 = smov 0   ;;  %s706_s25 = smov 0  }
   0x6 LB: > { %s494_s0 = sadd.s32 4294967295, %s658_s25   ;;  %s495_s26 = sadd.s32 4294967294, %s658_s25   ;;  %s658_s25 = sphi %s706_s25, %s19_s25   ;;  %s654_s24 = sphi %s704_s24, %s816_s24   ;;  %s650_s23 = sphi %s702_s23, %s815_s23   ;;  %s646_s22 = sphi %s700_s22, %s814_s22   ;;  %s642_s21 = sphi %s698_s21, %s813_s21   ;;  %s638_s20 = sphi %s696_s20, %s812_s20  }
   0x7   : > { %s31_s27 = sadd.s32 1, %s654_s24  ;;  %s157_s28 = sadd.s32 1, %s646_s22 }
   0x8   : > { %p33_p0 = scmp.ge.s32.totalorder %s31_s27, 2  ;;  %p167_p1 = scmp.ne.s32.totalorder %s646_s22, %s642_s21 }
   0x9   : > { %p168_p2 = scmp.eq.s32.totalorder %s494_s0, 1  ;;  %p173_p3 = scmp.ne.s32.totalorder %s642_s21, %s638_s20 }
   0xa   : > { %s818_s27 = smov (%p33_p0, %s31_s27), 0  ;;  %p174_p5 = scmp.eq.s32.totalorder %s495_s26, 1 }
   0xb   : > { %p736_p4 = por %p168_p2, %p167_p1  ;;  %s152_s30 = ssub.s32 %s654_s24, %s818_s27 }
   0xc   : > { %p498_p6 = scmp.ge.s32.totalorder %s658_s25, 1  ;;  %p155_p7 = scmp.eq.s32.totalorder %s152_s30, 0 }
   0xd   : > { %p743_p8 = por %p174_p5, %p173_p3  ;;  %p220_p9 = scmp.lt.s32.totalorder %s658_s25, 3 }
   0xe   : > { %s749_s7 = scalar_select %p155_p7, %s646_s22, %s157_s28  }
   0xf   : > { %p221_p10 = pnand %p498_p6, %p220_p9 }
  0x10   : > { %p255_p11 = scmp.lt.s32.totalorder (!%p221_p10), %s650_s23, 1  ;;  %s270_s18 = sld [smem:[#allocation2]] (!%p221_p10) }
  0x11   : > { %224 = sbr.rel (%p221_p10) target bundleno = 300 (0x12c), region = 40  ;;  %s252_s26 = sand.u32 (!%p221_p10), 1, %s642_s21  }
  0x12   : > { %s499_s28 = sshll.u32 (!%p221_p10), %s252_s26, 4  ;;  %s512_s30 = sshll.u32 (!%p221_p10), %s650_s23, 8 }
  0x13   : > { %s254_s8 = scalar_lea.vmem (!%p221_p10), [#allocation3], %s499_s28  ;;  %s407_s12 = scalar_lea.hbm (!%p221_p10), %s809_s5, %s512_s30 }
  0x14   : > { %s409_s9 = sshll.u32 (!%p221_p10), %s254_s8, 4  ;;  %s662_s15 = smov (!%p221_p10), [#allocation3]   ;;  %s410_s9 = int_to_ptr.vmem [resolvable:$true] %s409_s9 }
  0x16   : > { %v660_v0 = vmov 0.0   ;;  %v302_v1 = vld [vmem:[%s808_s4] sm:$0xff]  ;;  %s256_s10 = scalar_select %p255_p11, %s650_s23, 1  ;;  %v661_v2 = vmov 0   ;;  %vm314_vm0 = vcmask 1043456   ;;  %v271_v10 = vstv %s270_s18 }
  0x17   : > { %383 = vmatprep.mubr.f32.mxu0 %v660_v0  ;;  %570 = vset.pattern.permute.xlu0 %v661_v2  ;;  %v288_v18 = vmul.f32 1.442695, %v271_v10  ;;  %v296_v21 = vlaneseq  ;;  %v294_v29 = vld [vmem:[%s807_s3] sm:$0xff]  ;;  %vm310_vm1 = vcmask 31744   ;;  %s586_s23 = sshll.u32 %s662_s15, 4  ;;  %s587_s23 = int_to_ptr.vmem [resolvable:$false] %s586_s23 }
  0x18   : > { %305 = vperm.xlu0 %570, %v302_v1   ;;  %s257_s13 = scalar_lea.vmem %s805_s1, %s256_s10  ;;  %s511_s14 = sshll.u32 %s256_s10, 3 }
  0x19   : > { %s266_s17 = scalar_lea.vmem %s806_s2, %s511_s14  ;;  %v269_v3 = vld [vmem:[%s257_s13] sm:$0x1]  ;;  %v297_v23 = vshrl.u32 %v296_v21, 7  ;;  %s393_s13 = scalar_lea.sflag [#allocation4], %s252_s26 }
  0x1a   : > { %v272_v4 = vadd.f32 1e-07, %v269_v3  ;;  %v276_v5 = vsub.f32 1.0, %v269_v3  ;;  %v293_v6 = vld [vmem:[%s266_s17] sm:$0xff]  ;;  %s582_s14 = scalar_lea.vmem %s410_s9, 256  ;;  %s588_s16 = scalar_lea.vmem %s587_s23, 512 }
  0x1b   : > { %v309_v7 = vcombine.high %v293_v6, %v293_v6  ;;  %v298_v27 = vsub.s32 0, %v297_v23  ;;  %p583_p12 = scmp.ne.s32.totalorder %s410_s9, %s582_s14  ;;  %p589_p1 = scmp.lt.s32.totalorder %s410_s9, %s587_s23 }
  0x1c   : > { %572 = vlog2.f32 %v272_v4  ;;  %v277_v8 = vadd.f32 1e-07, %v276_v5  ;;  %p590_p2 = scmp.lt.s32.totalorder %s588_s16, %s582_s14 }
  0x1d   : > { %503 = vmatprep.subr.msk.mxu0 %vm314_vm0, %v309_v7  ;;  %p584_p13 = pnand %p583_p12, %p736_p4 }
  0x1e   : > { %574 = vlog2.f32 %v277_v8  ;;  %504 = vmatpush1.msk.msra.mxu0 %vm314_vm0, %v293_v6  ;;  %p591_p3 = por %p590_p2, %p589_p1 }
  0x1f   : > { %p585_p0 = pneg %p584_p13 }
  0x21   : > { %p592_p5 = pnand %p591_p3, %p585_p0 }
  0x29   : > { %v573_v9 = vpop.eup %572 }
  0x2a   : > { %v274_v11 = vmul.f32 0.6931472, %v573_v9 }
  0x2b   : > { %v575_v12 = vpop.eup %574 }
  0x2c   : > { %v275_v13 = vadd.f32 %v274_v11, %v271_v10  ;;  %v279_v14 = vmul.f32 0.6931472, %v575_v12 }
  0x2e   : > { %v280_v15 = vsub.f32 %v275_v13, %v279_v14 }
  0x30   : > { %v502_v16 = vmul.f32 -1.5, %v280_v15 }
  0x32   : > { %v283_v17 = vmul.f32 1.442695, %v502_v16 }
  0x34   : > { %576 = vpow2.f32 %v283_v17 }
  0x35   : > { %578 = vpow2.f32 %v288_v18 }
  0x41   : > { %v577_v19 = vpop.eup %576 }
  0x42   : > { %v285_v20 = vadd.f32 1.0, %v577_v19  ;;  %v579_v22 = vpop.eup %578 }
  0x43   : > { %v290_v24 = vadd.f32 1.0, %v579_v22 }
  0x44   : > { %580 = vrcp.f32 %v285_v20 }
  0x51   : > { %v581_v25 = vpop.eup %580 }
  0x52   : > { %v291_v26 = vsub.f32 1.0, %v581_v25 }
  0x54   : > { %v292_v28 = vmul.f32 %v291_v26, %v290_v24 }
  0x56   : > { %v299_v30 = vrot.slane %v292_v28, %v298_v27 }
  0x58   : > { %v301_v31 = vmul.f32 %v299_v30, %v294_v29 }
  0x5a   : > { %505 = vmatmul.mubr.msk.f32.vlgmr.msra.gmra.mxu0 %vm310_vm1, %v301_v31 }
  0x93   : > { %v306_v32 = vpop.permute.xlu0 %305 }
 0x11a   : > { %v385_v33 = vpop.f32.mrf.mxu0 }
 0x11b   : > { %v386_v34 = vadd.f32 %v385_v33, %v306_v32 }
 0x11c   : > { %v387_v35 = vpop.f32.mrf.mxu0 }
 0x11d   : > { %390 = vst [vmem:[%s254_s8] sm:$0xff] %v386_v34  ;;  %v388_v36 = vadd.f32 %v387_v35, %v306_v32 }
 0x11f   : > { %391 = vst [vmem:[%s254_s8 + $0x8] sm:$0xff] %v388_v36 }
 0x120   : > { %595 = shalt.err (!%p592_p5)
}
 0x121   : > { %s596_s17 = scalar_lea.hbm %s407_s12, 256  ;;  %s600_s0 = scalar_lea.hbm %s809_s5, 512 }
 0x122   : > { %p597_p6 = scmp.ne.s32.totalorder %s407_s12, %s596_s17  ;;  %p601_p10 = scmp.lt.s32.totalorder %s407_s12, %s809_s5 }
 0x123   : > { %p602_p11 = scmp.lt.s32.totalorder %s600_s0, %s596_s17 }
 0x124   : > { %p598_p7 = pnand %p597_p6, %p736_p4 }
 0x125   : > { %p603_p12 = por %p602_p11, %p601_p10 }
 0x126   : > { %p599_p9 = pneg %p598_p7 }
 0x128   : > { %p604_p13 = pnand %p603_p12, %p599_p9 }
 0x12a   : > { %607 = shalt.err (!%p604_p13)
}
 0x12b   : > { %513 = dma.vmem_to_hbm [thread:$0]  (%p736_p4), %s410_s9, 256, %s407_s12, %s393_s13  }
 0x12c PF: > { %p519_p0 = scmp.ge.s32.totalorder %s658_s25, 2  ;;  %s421_s30 = sand.u32 1, %s638_s20  }
 0x12d   : > { %s422_s8 = scalar_lea.sflag [#allocation4], %s421_s30 }
 0x12e   : > { %p516_p1 = pnand %p519_p0, %p743_p8 }
 0x130   : > { %p517_p2 = pneg %p516_p1 }
 0x132   : > { %633 = dma.done.wait (%p517_p2), %s422_s8, 256  }
 0x133   : > { %635 = vsyncadd (%p517_p2), %s422_s8, 4294967040  ;;  %s19_s25 = sadd.s32 1, %s658_s25   ;;  %s812_s20 = smov %s642_s21 }
 0x134   : > { %p16_p3 = scmp.ge.s32.totalorder %s19_s25, 4   ;;  %s813_s21 = smov %s646_s22 }
 0x135   : > { %s814_s22 = smov %s749_s7  ;;  %s815_s23 = smov %s654_s24 }
 0x136   : > { %s816_s24 = smov %s818_s27  ;;  %18 = sbr.rel (!%p16_p3) target bundleno = 6 (0x6), region = 78 }
 0x13b   :  { %427 = vsyncpa [#allocation4], 1 }
 0x13c   :  { %429 = vsyncpa [#allocation4 + $0x1], 1 }

// kernel: tpu_custom_call.1
= control target key start
LH: loop header
LB: loop body
LE: loop exit
PB: predicated region body
PF: predicated region fallthrough
CT: control target
= control target key end

     0   :  { %s804_s0 = inlined_call_operand.<no memory space> [shape: f32[1], index: 0, kind: input, shape index: {}]   ;;  %s805_s1 = inlined_call_operand.vmem [shape: f32[2,1,4], index: 1, kind: input, shape index: {}]   ;;  %s806_s2 = inlined_call_operand.vmem [shape: f32[2,4,256], index: 2, kind: input, shape index: {}]   ;;  %s807_s3 = inlined_call_operand.vmem [shape: f32[8,4], index: 3, kind: input, shape index: {}]   ;;  %s808_s4 = inlined_call_operand.vmem [shape: f32[8,1], index: 4, kind: input, shape index: {}]   ;;  %s809_s5 = inlined_call_operand.hbm [shape: f32[2,8,256], index: 5, kind: output, shape index: {}]  }
   0x1   :  { %10 = sst [smem:[#allocation2]] %s804_s0 }
   0x2   :  { %11 = vsyncpa [#allocation4], 0 }
   0x3   :  { %13 = vsyncpa [#allocation4 + $0x1], 0  ;;  %s696_s20 = smov 0   ;;  %s698_s21 = smov 0  }
   0x4   :  { %s700_s22 = smov 0   ;;  %s702_s23 = smov 0  }
   0x5   :  { %s704_s24 = smov 0   ;;  %s706_s25 = smov 0  }
   0x6 LB: > { %s494_s0 = sadd.s32 4294967295, %s658_s25   ;;  %s495_s26 = sadd.s32 4294967294, %s658_s25   ;;  %s658_s25 = sphi %s706_s25, %s19_s25   ;;  %s654_s24 = sphi %s704_s24, %s816_s24   ;;  %s650_s23 = sphi %s702_s23, %s815_s23   ;;  %s646_s22 = sphi %s700_s22, %s814_s22   ;;  %s642_s21 = sphi %s698_s21, %s813_s21   ;;  %s638_s20 = sphi %s696_s20, %s812_s20  }
   0x7   : > { %s31_s27 = sadd.s32 1, %s654_s24  ;;  %s157_s28 = sadd.s32 1, %s646_s22 }
   0x8   : > { %p33_p0 = scmp.ge.s32.totalorder %s31_s27, 2  ;;  %p167_p1 = scmp.ne.s32.totalorder %s646_s22, %s642_s21 }
   0x9   : > { %p168_p2 = scmp.eq.s32.totalorder %s494_s0, 1  ;;  %p173_p3 = scmp.ne.s32.totalorder %s642_s21, %s638_s20 }
   0xa   : > { %s818_s27 = smov (%p33_p0, %s31_s27), 0  ;;  %p174_p5 = scmp.eq.s32.totalorder %s495_s26, 1 }
   0xb   : > { %p736_p4 = por %p168_p2, %p167_p1  ;;  %s152_s30 = ssub.s32 %s654_s24, %s818_s27 }
   0xc   : > { %p498_p6 = scmp.ge.s32.totalorder %s658_s25, 1  ;;  %p155_p7 = scmp.eq.s32.totalorder %s152_s30, 0 }
   0xd   : > { %p743_p8 = por %p174_p5, %p173_p3  ;;  %p220_p9 = scmp.lt.s32.totalorder %s658_s25, 3 }
   0xe   : > { %s749_s7 = scalar_select %p155_p7, %s646_s22, %s157_s28  }
   0xf   : > { %p221_p10 = pnand %p498_p6, %p220_p9 }
  0x10   : > { %p255_p11 = scmp.lt.s32.totalorder (!%p221_p10), %s650_s23, 1  ;;  %s270_s18 = sld [smem:[#allocation2]] (!%p221_p10) }
  0x11   : > { %224 = sbr.rel (%p221_p10) target bundleno = 300 (0x12c), region = 40  ;;  %s252_s26 = sand.u32 (!%p221_p10), 1, %s642_s21  }
  0x12   : > { %s499_s28 = sshll.u32 (!%p221_p10), %s252_s26, 4  ;;  %s512_s30 = sshll.u32 (!%p221_p10), %s650_s23, 8 }
  0x13   : > { %s254_s8 = scalar_lea.vmem (!%p221_p10), [#allocation3], %s499_s28  ;;  %s407_s12 = scalar_lea.hbm (!%p221_p10), %s809_s5, %s512_s30 }
  0x14   : > { %s409_s9 = sshll.u32 (!%p221_p10), %s254_s8, 4  ;;  %s662_s15 = smov (!%p221_p10), [#allocation3]   ;;  %s410_s9 = int_to_ptr.vmem [resolvable:$true] %s409_s9 }
  0x16   : > { %v660_v0 = vmov 0.0   ;;  %v302_v1 = vld [vmem:[%s808_s4] sm:$0xff]  ;;  %s256_s10 = scalar_select %p255_p11, %s650_s23, 1  ;;  %v661_v2 = vmov 0   ;;  %vm314_vm0 = vcmask 1043456   ;;  %v271_v10 = vstv %s270_s18 }
  0x17   : > { %383 = vmatprep.mubr.f32.mxu0 %v660_v0  ;;  %570 = vset.pattern.permute.xlu0 %v661_v2  ;;  %v288_v18 = vmul.f32 1.442695, %v271_v10  ;;  %v296_v21 = vlaneseq  ;;  %v294_v29 = vld [vmem:[%s807_s3] sm:$0xff]  ;;  %vm310_vm1 = vcmask 31744   ;;  %s586_s23 = sshll.u32 %s662_s15, 4  ;;  %s587_s23 = int_to_ptr.vmem [resolvable:$false] %s586_s23 }
  0x18   : > { %305 = vperm.xlu0 %570, %v302_v1   ;;  %s257_s13 = scalar_lea.vmem %s805_s1, %s256_s10  ;;  %s511_s14 = sshll.u32 %s256_s10, 3 }
  0x19   : > { %s266_s17 = scalar_lea.vmem %s806_s2, %s511_s14  ;;  %v269_v3 = vld [vmem:[%s257_s13] sm:$0x1]  ;;  %v297_v23 = vshrl.u32 %v296_v21, 7  ;;  %s393_s13 = scalar_lea.sflag [#allocation4], %s252_s26 }
  0x1a   : > { %v272_v4 = vadd.f32 1e-07, %v269_v3  ;;  %v276_v5 = vsub.f32 1.0, %v269_v3  ;;  %v293_v6 = vld [vmem:[%s266_s17] sm:$0xff]  ;;  %s582_s14 = scalar_lea.vmem %s410_s9, 256  ;;  %s588_s16 = scalar_lea.vmem %s587_s23, 512 }
  0x1b   : > { %v309_v7 = vcombine.high %v293_v6, %v293_v6  ;;  %v298_v27 = vsub.s32 0, %v297_v23  ;;  %p583_p12 = scmp.ne.s32.totalorder %s410_s9, %s582_s14  ;;  %p589_p1 = scmp.lt.s32.totalorder %s410_s9, %s587_s23 }
  0x1c   : > { %572 = vlog2.f32 %v272_v4  ;;  %v277_v8 = vadd.f32 1e-07, %v276_v5  ;;  %p590_p2 = scmp.lt.s32.totalorder %s588_s16, %s582_s14 }
  0x1d   : > { %503 = vmatprep.subr.msk.mxu0 %vm314_vm0, %v309_v7  ;;  %p584_p13 = pnand %p583_p12, %p736_p4 }
  0x1e   : > { %574 = vlog2.f32 %v277_v8  ;;  %504 = vmatpush1.msk.msra.mxu0 %vm314_vm0, %v293_v6  ;;  %p591_p3 = por %p590_p2, %p589_p1 }
  0x1f   : > { %p585_p0 = pneg %p584_p13 }
  0x21   : > { %p592_p5 = pnand %p591_p3, %p585_p0 }
  0x29   : > { %v573_v9 = vpop.eup %572 }
  0x2a   : > { %v274_v11 = vmul.f32 0.6931472, %v573_v9 }
  0x2b   : > { %v575_v12 = vpop.eup %574 }
  0x2c   : > { %v275_v13 = vadd.f32 %v274_v11, %v271_v10  ;;  %v279_v14 = vmul.f32 0.6931472, %v575_v12 }
  0x2e   : > { %v280_v15 = vsub.f32 %v275_v13, %v279_v14 }
  0x30   : > { %v502_v16 = vmul.f32 -1.5, %v280_v15 }
  0x32   : > { %v283_v17 = vmul.f32 1.442695, %v502_v16 }
  0x34   : > { %576 = vpow2.f32 %v283_v17 }
  0x35   : > { %578 = vpow2.f32 %v288_v18 }
  0x41   : > { %v577_v19 = vpop.eup %576 }
  0x42   : > { %v285_v20 = vadd.f32 1.0, %v577_v19  ;;  %v579_v22 = vpop.eup %578 }
  0x43   : > { %v290_v24 = vadd.f32 1.0, %v579_v22 }
  0x44   : > { %580 = vrcp.f32 %v285_v20 }
  0x51   : > { %v581_v25 = vpop.eup %580 }
  0x52   : > { %v291_v26 = vsub.f32 1.0, %v581_v25 }
  0x54   : > { %v292_v28 = vmul.f32 %v291_v26, %v290_v24 }
  0x56   : > { %v299_v30 = vrot.slane %v292_v28, %v298_v27 }
  0x58   : > { %v301_v31 = vmul.f32 %v299_v30, %v294_v29 }
  0x5a   : > { %505 = vmatmul.mubr.msk.f32.vlgmr.msra.gmra.mxu0 %vm310_vm1, %v301_v31 }
  0x93   : > { %v306_v32 = vpop.permute.xlu0 %305 }
 0x11a   : > { %v385_v33 = vpop.f32.mrf.mxu0 }
 0x11b   : > { %v386_v34 = vadd.f32 %v385_v33, %v306_v32 }
 0x11c   : > { %v387_v35 = vpop.f32.mrf.mxu0 }
 0x11d   : > { %390 = vst [vmem:[%s254_s8] sm:$0xff] %v386_v34  ;;  %v388_v36 = vadd.f32 %v387_v35, %v306_v32 }
 0x11f   : > { %391 = vst [vmem:[%s254_s8 + $0x8] sm:$0xff] %v388_v36 }
 0x120   : > { %595 = shalt.err (!%p592_p5)
}
 0x121   : > { %s596_s17 = scalar_lea.hbm %s407_s12, 256  ;;  %s600_s0 = scalar_lea.hbm %s809_s5, 512 }
 0x122   : > { %p597_p6 = scmp.ne.s32.totalorder %s407_s12, %s596_s17  ;;  %p601_p10 = scmp.lt.s32.totalorder %s407_s12, %s809_s5 }
 0x123   : > { %p602_p11 = scmp.lt.s32.totalorder %s600_s0, %s596_s17 }
 0x124   : > { %p598_p7 = pnand %p597_p6, %p736_p4 }
 0x125   : > { %p603_p12 = por %p602_p11, %p601_p10 }
 0x126   : > { %p599_p9 = pneg %p598_p7 }
 0x128   : > { %p604_p13 = pnand %p603_p12, %p599_p9 }
 0x12a   : > { %607 = shalt.err (!%p604_p13)
}
 0x12b   : > { %513 = dma.vmem_to_hbm [thread:$0]  (%p736_p4), %s410_s9, 256, %s407_s12, %s393_s13  }
 0x12c PF: > { %p519_p0 = scmp.ge.s32.totalorder %s658_s25, 2  ;;  %s421_s30 = sand.u32 1, %s638_s20  }
 0x12d   : > { %s422_s8 = scalar_lea.sflag [#allocation4], %s421_s30 }
 0x12e   : > { %p516_p1 = pnand %p519_p0, %p743_p8 }
 0x130   : > { %p517_p2 = pneg %p516_p1 }
 0x132   : > { %633 = dma.done.wait (%p517_p2), %s422_s8, 256  }
 0x133   : > { %635 = vsyncadd (%p517_p2), %s422_s8, 4294967040  ;;  %s19_s25 = sadd.s32 1, %s658_s25   ;;  %s812_s20 = smov %s642_s21 }
 0x134   : > { %p16_p3 = scmp.ge.s32.totalorder %s19_s25, 4   ;;  %s813_s21 = smov %s646_s22 }
 0x135   : > { %s814_s22 = smov %s749_s7  ;;  %s815_s23 = smov %s654_s24 }
 0x136   : > { %s816_s24 = smov %s818_s27  ;;  %18 = sbr.rel (!%p16_p3) target bundleno = 6 (0x6), region = 78 }
 0x13b   :  { %427 = vsyncpa [#allocation4], 1 }
 0x13c   :  { %429 = vsyncpa [#allocation4 + $0x1], 1 }

</bundles_post_ra>
